<compile_context>
chip_gen: v5e
topology: v5e:2x2
jax: 0.10.0
libtpu: 0.0.40
codegen_flags: <defaults>
</compile_context>

<pallas_src>
import jax
import jax.numpy as jnp
from jax.experimental import pallas as pl
from jax.experimental.pallas import tpu as pltpu

_LANES = 128


def _round_up(n: int, m: int) -> int:
    return ((n + m - 1) // m) * m


def _mlp_kernel(x_ref, w1_ref, b1_ref, w2_ref, b2_ref, o_ref):
    """One batch tile of ReLU(x @ w1 + b1) @ w2 + b2.

    x_ref  : (TB, n_in)       input tile (f32 or bf16)
    w1_ref : (n_in, Hp)       hidden weights (same dtype as x), VMEM-resident
    b1_ref : (1, Hp)   f32    hidden bias (zero-padded lanes)
    w2_ref : (1, Hp)   f32    output weights as a lane row (zero-padded lanes)
    b2_ref : (1, 1)    f32    output bias (SMEM scalar)
    o_ref  : (R, 1, 128) f32  lane l of row r holds batch element r*128 + l
    """
    # Layer 1 on the MXU (f32 accumulate); bias + ReLU on the VPU, full-vreg lane-dense.
    h = jnp.dot(x_ref[...], w1_ref[...], preferred_element_type=jnp.float32)  # (TB, Hp)
    h = jnp.maximum(h + b1_ref[...], 0.0)

    # Layer 2 (Hp -> 1): contract Hp per batch element while keeping results
    # lane-dense.  Split the batch tile into rows of 128 (layout-preserving reshape:
    # last dim unchanged), then do a flash-attention-style batched contraction so the
    # 128 distinct results of each row land directly on the 128 lanes of the output
    # -- no sublane->lane relayout, 4 B/row of HBM writeback.
    r_rows, _, lanes = o_ref.shape
    hp = h.shape[-1]
    hr = h.reshape(r_rows, lanes, hp)                                    # (R, 128, Hp)
    w2b = jnp.broadcast_to(w2_ref[...].reshape(1, 1, hp), (r_rows, 1, hp))
    out = jnp.einsum("rqh,rlh->rql", w2b, hr,
                     preferred_element_type=jnp.float32)                 # (R, 1, 128)
    o_ref[...] = out + b2_ref[0, 0]


def prepare_params(w1, b1, w2, b2):
    """Pad/pack parameters once (hoisted out of the per-call path).

    w1: (n_in, H)   b1: (1, H) or (H,)   w2: (H, 1)   b2: (1, 1) / scalar
    Returns (w1p, b1p, w2p, b2p) with the hidden dim zero-padded to a multiple of
    128 (numerically inert through ReLU and the zeroed w2 lanes).
    """
    n_in, h_dim = w1.shape
    hp = _round_up(max(h_dim, 1), _LANES)
    pad = ((0, 0), (0, hp - h_dim))
    w1p = jnp.pad(w1.astype(jnp.float32), pad)                             # (n_in, Hp)
    b1p = jnp.pad(jnp.reshape(b1, (1, h_dim)).astype(jnp.float32), pad)    # (1, Hp)
    w2p = jnp.pad(jnp.reshape(w2.astype(jnp.float32), (1, h_dim)), pad)    # (1, Hp)
    b2p = jnp.reshape(b2.astype(jnp.float32), (1, 1))                      # (1, 1)
    return w1p, b1p, w2p, b2p


def devnet_forward(x, params, *, block_b: int = 4096):
    """Devnet forward: ReLU(x @ w1 + b1) @ w2 + b2, returns (B, 1) float32.

    x may be float32 or bfloat16; passing bf16 halves the dominant HBM read on
    v5e/v6e/v7x (accumulation and the epilogue stay f32).
    """
    assert x.ndim == 2
    w1p, b1p, w2p, b2p = params
    B, n_in = x.shape
    assert w1p.shape[0] == n_in
    hp = w1p.shape[1]

    # Batch tile: multiple of 128 (lane-dense output rows).  Cap it so the grid has
    # >=2 steps for large batches (both v7x TensorCores get work), and never bigger
    # than needed for small batches.
    block_b = _round_up(max(block_b, _LANES), _LANES)
    tb_cap = _round_up(pl.cdiv(B, 2), _LANES) if B > _LANES else _LANES
    tb = max(_LANES, min(block_b, tb_cap, _round_up(B, _LANES)))
    num_steps = pl.cdiv(B, tb)
    r_rows = tb // _LANES
    total_rows = num_steps * r_rows

    # MXU operands share x's dtype; this cast is a tiny (n_in, Hp) array.
    w1p = w1p.astype(x.dtype)

    flops = 2 * B * n_in * hp + 2 * B * hp
    bytes_accessed = (x.size * x.dtype.itemsize
                      + w1p.size * w1p.dtype.itemsize
                      + (b1p.size + w2p.size + b2p.size) * 4
                      + B * 4)

    out3 = pl.pallas_call(
        _mlp_kernel,
        out_shape=jax.ShapeDtypeStruct((total_rows, 1, _LANES), jnp.float32),
        grid=(num_steps,),
        in_specs=[
            # NOTE: x is intentionally NOT padded.  The last batch tile may be
            # ragged; out-of-bounds rows read undefined VMEM -> garbage outputs for
            # those rows only (rows never mix), and they are sliced off below.
            pl.BlockSpec((tb, n_in), lambda i: (i, 0)),     # x: tiled over batch
            pl.BlockSpec((n_in, hp), lambda i: (0, 0)),     # w1: VMEM-resident
            pl.BlockSpec((1, hp), lambda i: (0, 0)),        # b1: VMEM-resident
            pl.BlockSpec((1, hp), lambda i: (0, 0)),        # w2 row: VMEM-resident
            pl.BlockSpec(memory_space=pltpu.MemorySpace.SMEM),  # b2 scalar
        ],
        out_specs=pl.BlockSpec((r_rows, 1, _LANES), lambda i: (i, 0, 0)),
        compiler_params=pltpu.CompilerParams(
            dimension_semantics=("parallel",),  # v7x: split batch grid across both TCs
        ),
        cost_estimate=pl.CostEstimate(flops=flops, transcendentals=0,
                                      bytes_accessed=bytes_accessed),
    )(x, w1p, b1p, w2p, b2p)

    # (total_rows, 1, 128) rows are 128 consecutive batch elements -> flatten, drop
    # the padded/ragged tail, return the (B, 1) column.
    return out3.reshape(-1)[:B, None]


def init_params(key, n_input, inner_neurons=20):
    """Deterministic init mirroring the PyTorch module:
    xavier_uniform_(gain=calculate_gain('relu')) for weights, default Linear bias init.
    Weights are stored pre-transposed as (in, out) so the kernel does x @ W."""
    k1, k2, k3, k4 = jax.random.split(key, 4)
    gain = jnp.sqrt(2.0)  # nn.init.calculate_gain('relu')

    bound1 = gain * jnp.sqrt(6.0 / (n_input + inner_neurons))
    w1 = jax.random.uniform(k1, (n_input, inner_neurons), jnp.float32, -bound1, bound1)
    bb1 = 1.0 / jnp.sqrt(float(n_input))
    b1 = jax.random.uniform(k2, (1, inner_neurons), jnp.float32, -bb1, bb1)

    bound2 = gain * jnp.sqrt(6.0 / (inner_neurons + 1))
    w2 = jax.random.uniform(k3, (inner_neurons, 1), jnp.float32, -bound2, bound2)
    bb2 = 1.0 / jnp.sqrt(float(inner_neurons))
    b2 = jax.random.uniform(k4, (1, 1), jnp.float32, -bb2, bb2)

    return w1, b1, w2, b2


if __name__ == "__main__":
    key = jax.random.PRNGKey(0)
    kx, kp = jax.random.split(key)

    batch = 16
    n_input = 32
    inner_neurons = 20

    # Quantize inputs/params to a 1/8 grid so every product and sum is exact in both
    # f32 and bf16-input/f32-accumulate pathways -> the correctness check is
    # independent of the MXU precision mode and can use a tight tolerance.
    q = lambda a: jnp.round(a * 8.0) / 8.0

    x = q(jax.random.normal(kx, (batch, n_input), dtype=jnp.float32))
    w1, b1, w2, b2 = (q(p) for p in init_params(kp, n_input, inner_neurons))
    params = prepare_params(w1, b1, w2, b2)

    def ref_fn(xx):
        return jnp.maximum(xx @ w1 + b1, 0.0) @ w2 + b2

    # Small single-tile case (f32 path, exact module semantics).
    out = jax.block_until_ready(devnet_forward(x, params))
    assert out.shape == (batch, 1)
    assert jnp.allclose(out, ref_fn(x), atol=1e-6, rtol=1e-6)

    # Multi-tile case: grid of >=2 steps plus a ragged last tile (no x padding).
    x_big = q(jax.random.normal(jax.random.PRNGKey(1), (300, n_input), dtype=jnp.float32))
    out_big = jax.block_until_ready(devnet_forward(x_big, params))
    assert out_big.shape == (300, 1)
    assert jnp.allclose(out_big, ref_fn(x_big), atol=1e-6, rtol=1e-6)

    # bf16 fast path (halves the dominant HBM read); grid values are bf16-exact so
    # the result matches the f32 reference.
    out_bf16 = jax.block_until_ready(devnet_forward(x_big.astype(jnp.bfloat16), params))
    assert out_bf16.shape == (300, 1)
    assert jnp.allclose(out_bf16, ref_fn(x_big), atol=1e-6, rtol=1e-6)

    print("KERNEL_OK")
</pallas_src>

<mosaic_0001>
module attributes {stable_mosaic.version = 11 : i64} {
  func.func @_mlp_kernel(%arg0: i32, %arg1: memref<128x32xf32, #tpu.memory_space<vmem>>, %arg2: memref<32x128xf32, #tpu.memory_space<vmem>>, %arg3: memref<1x128xf32, #tpu.memory_space<vmem>>, %arg4: memref<1x128xf32, #tpu.memory_space<vmem>>, %arg5: memref<1x1xf32, #tpu.memory_space<smem>>, %arg6: memref<1x1x128xf32, #tpu.memory_space<vmem>>) attributes {dimension_semantics = [#tpu.dimension_semantics<parallel>], iteration_bounds = array<i64: 1>, scalar_prefetch = 0 : i64, scratch_operands = 0 : i64, tpu.core_type = #tpu.core_type<tc>, window_params = [{transform_indices = @transform_0, window_bounds = array<i64: 128, 32>}, {pipeline_mode = #tpu.pipeline_mode<synchronous>, transform_indices = @transform_1, window_bounds = array<i64: 32, 128>}, {pipeline_mode = #tpu.pipeline_mode<synchronous>, transform_indices = @transform_2, window_bounds = array<i64: 1, 128>}, {pipeline_mode = #tpu.pipeline_mode<synchronous>, transform_indices = @transform_3, window_bounds = array<i64: 1, 128>}, {transform_indices = @transform_4, window_bounds = array<i64: 1, 1>}, {transform_indices = @transform_5, window_bounds = array<i64: 1, 1, 128>}]} {
    %c0 = arith.constant 0 : index
    %c0_0 = arith.constant 0 : index
    %0 = vector.load %arg1[%c0, %c0_0] : memref<128x32xf32, #tpu.memory_space<vmem>>, vector<128x32xf32>
    %c0_1 = arith.constant 0 : index
    %c0_2 = arith.constant 0 : index
    %1 = vector.load %arg2[%c0_1, %c0_2] : memref<32x128xf32, #tpu.memory_space<vmem>>, vector<32x128xf32>
    %cst = arith.constant dense<0.000000e+00> : vector<128x128xf32>
    %2 = tpu.matmul %0, %1, %cst {dimension_numbers = #tpu.dot_dimension_numbers<[1], [0], [0], [1], [0, 0, 1, 1], [], []>} : vector<128x32xf32>, vector<32x128xf32>, vector<128x128xf32> -> vector<128x128xf32>
    %c0_3 = arith.constant 0 : index
    %c0_4 = arith.constant 0 : index
    %3 = vector.load %arg3[%c0_3, %c0_4] : memref<1x128xf32, #tpu.memory_space<vmem>>, vector<1x128xf32>
    %4 = vector.broadcast %3 : vector<1x128xf32> to vector<128x128xf32>
    %5 = arith.addf %2, %4 : vector<128x128xf32>
    %cst_5 = arith.constant 0.000000e+00 : f32
    %6 = vector.broadcast %cst_5 : f32 to vector<128x128xf32>
    %7 = arith.maximumf %5, %6 : vector<128x128xf32>
    %8 = vector.shape_cast %7 : vector<128x128xf32> to vector<1x128x128xf32>
    %c0_6 = arith.constant 0 : index
    %c0_7 = arith.constant 0 : index
    %9 = vector.load %arg4[%c0_6, %c0_7] : memref<1x128xf32, #tpu.memory_space<vmem>>, vector<1x128xf32>
    %10 = vector.shape_cast %9 : vector<1x128xf32> to vector<1x1x128xf32>
    "tpu.trace_start"() <{level = 10 : i32, message = "rqh,rlh->rql"}> : () -> ()
    %cst_8 = arith.constant dense<0.000000e+00> : vector<1x1x128xf32>
    %11 = tpu.matmul %10, %8, %cst_8 {dimension_numbers = #tpu.dot_dimension_numbers<[2], [2], [1], [1], [0, 0, 0, 1, 1, 1], [0], [0]>} : vector<1x1x128xf32>, vector<1x128x128xf32>, vector<1x1x128xf32> -> vector<1x1x128xf32>
    "tpu.trace_stop"() : () -> ()
    %c0_9 = arith.constant 0 : index
    %c0_10 = arith.constant 0 : index
    %12 = memref.load %arg5[%c0_9, %c0_10] : memref<1x1xf32, #tpu.memory_space<smem>>
    %13 = vector.broadcast %12 : f32 to vector<1x1x128xf32>
    %14 = arith.addf %11, %13 : vector<1x1x128xf32>
    %c0_11 = arith.constant 0 : index
    %c0_12 = arith.constant 0 : index
    %c0_13 = arith.constant 0 : index
    %15 = vector.load %arg6[%c0_11, %c0_12, %c0_13] : memref<1x1x128xf32, #tpu.memory_space<vmem>>, vector<1x1x128xf32>
    tpu.vector_store %arg6[%c0_11, %c0_12, %c0_13], %14 {strides = array<i32>} : memref<1x1x128xf32, #tpu.memory_space<vmem>>, vector<1x1x128xf32>,
    return
  }
  func.func @transform_0(%arg0: i32) -> (i32, i32) {
    %c0_i32 = arith.constant 0 : i32
    %c0_i32_0 = arith.constant 0 : i32
    return %arg0, %c0_i32 : i32, i32
  }
  func.func @transform_1(%arg0: i32) -> (i32, i32) {
    %c0_i32 = arith.constant 0 : i32
    %c0_i32_0 = arith.constant 0 : i32
    %c0_i32_1 = arith.constant 0 : i32
    return %c0_i32, %c0_i32_0 : i32, i32
  }
  func.func @transform_2(%arg0: i32) -> (i32, i32) {
    %c0_i32 = arith.constant 0 : i32
    %c0_i32_0 = arith.constant 0 : i32
    %c0_i32_1 = arith.constant 0 : i32
    return %c0_i32, %c0_i32_0 : i32, i32
  }
  func.func @transform_3(%arg0: i32) -> (i32, i32) {
    %c0_i32 = arith.constant 0 : i32
    %c0_i32_0 = arith.constant 0 : i32
    %c0_i32_1 = arith.constant 0 : i32
    return %c0_i32, %c0_i32_0 : i32, i32
  }
  func.func @transform_4(%arg0: i32) -> (i32, i32) {
    %c0_i32 = arith.constant 0 : i32
    %c0_i32_0 = arith.constant 0 : i32
    %c0_i32_1 = arith.constant 0 : i32
    return %c0_i32, %c0_i32_0 : i32, i32
  }
  func.func @transform_5(%arg0: i32) -> (i32, i32, i32) {
    %c0_i32 = arith.constant 0 : i32
    %c0_i32_0 = arith.constant 0 : i32
    %c0_i32_1 = arith.constant 0 : i32
    return %arg0, %c0_i32, %c0_i32_0 : i32, i32, i32
  }
}

</mosaic_0001>

<bundles_post_ra>
// kernel: tpu_custom_call.1
= control target key start
LH: loop header
LB: loop body
LE: loop exit
PB: predicated region body
PF: predicated region fallthrough
CT: control target
= control target key end

     0   :  { %11 = vsyncpa [#allocation4], 0  ;;  %s427_s0 = inlined_call_operand.hbm [shape: f32[16,32], index: 0, kind: input, shape index: {}]   ;;  %s428_s1 = inlined_call_operand.hbm [shape: f32[32,128], index: 1, kind: input, shape index: {}]   ;;  %s429_s2 = inlined_call_operand.vmem [shape: f32[1,128], index: 2, kind: input, shape index: {}]   ;;  %s430_s3 = inlined_call_operand.vmem [shape: f32[1,128], index: 3, kind: input, shape index: {}]   ;;  %s431_s4 = inlined_call_operand.<no memory space> [shape: f32[1,1], index: 4, kind: input, shape index: {}]   ;;  %s432_s5 = inlined_call_operand.hbm [shape: f32[1,1,128], index: 5, kind: output, shape index: {}]  }
   0x1   :  { %12 = vsyncpa [#allocation7], 0 }
   0x2   :  { %13 = vsyncpa [#allocation5], 0 }
   0x3   :  { %17 = vsyncadd [#allocation4], 1792  ;;  %s18_s20 = sshll.u32 %s427_s0, 4  ;;  %s358_s21 = smov [#allocation3]   ;;  %s19_s20 = int_to_ptr.hbm [resolvable:$true] %s18_s20 }
   0x4   :  { %s20_s22 = sshll.u32 %s358_s21, 4  ;;  %s31_s25 = sshll.u32 %s428_s1, 4  ;;  %s21_s22 = int_to_ptr.vmem [resolvable:$true] %s20_s22  ;;  %s32_s25 = int_to_ptr.hbm [resolvable:$true] %s31_s25 }
   0x5   :  { %s359_s26 = smov 128   ;;  %s360_s27 = smov 8  }
   0x6   :  { %26 = dma.hbm_to_vmem [thread:$0]  %s19_s20, 256, %s21_s22, [#allocation4], %s359_s26, %s359_s26, %s360_s27  }
   0x7   :  { %s361_s28 = smov [#allocation6]  }
   0x8   :  { %s33_s29 = sshll.u32 %s361_s28, 4  ;;  %s34_s29 = int_to_ptr.vmem [resolvable:$true] %s33_s29 }
   0x9   :  { %39 = dma.hbm_to_vmem [thread:$0]  %s32_s25, 512, %s34_s29, [#allocation7], %s359_s26, %s359_s26, %s360_s27  }
   0xa   :  { %352 = dma.done.wait [#allocation4], 2048  }
   0xb   :  { %353 = vsyncadd [#allocation4], 4294965248 }
   0xc   :  { %354 = dma.done.wait [#allocation7], 512  }
   0xd   :  { %355 = vsyncadd [#allocation7], 4294966784  ;;  %v73_v0 = vld [vmem:[#allocation6 + $0x18] sm:$0xff]  ;;  %v72_v1 = vld [vmem:[#allocation6 + $0x10] sm:$0xff]  ;;  %vm78_vm0 = vcmask 261120   ;;  %s362_s8 = smov [#allocation8]  }
   0xe   :  { %266 = vmatpush.msra.mxu2 %v73_v0  ;;  %267 = vmatpush.msra.mxu3 %v73_v0  ;;  %v71_v2 = vld [vmem:[#allocation6 + $0x8] sm:$0xff]  ;;  %v70_v3 = vld [vmem:[#allocation6] sm:$0xff]  ;;  %v60_v4 = vld [vmem:[#allocation3 + $0x30] sm:$0xff]  ;;  %s237_s9 = sshll.u32 %s362_s8, 4  ;;  %s239_s12 = sshll.u32 %s432_s5, 4  ;;  %s238_s9 = int_to_ptr.vmem [resolvable:$true] %s237_s9  ;;  %s240_s12 = int_to_ptr.hbm [resolvable:$true] %s239_s12 }
   0xf   :  { %139 = vmatpush.msra.mxu0 %v73_v0  ;;  %v66_v5 = vld [vmem:[#allocation3 + $0x60] sm:$0xff]  ;;  %v61_v7 = vld [vmem:[#allocation3 + $0x38] sm:$0xff]  ;;  %v67_v8 = vld [vmem:[#allocation3 + $0x68] sm:$0xff] }
  0x10   :  { %268 = vmatpush.msra.mxu2 %v72_v1  ;;  %269 = vmatpush.msra.mxu3 %v72_v1  ;;  %v54_v6 = vld [vmem:[#allocation3] sm:$0xff]  ;;  %v55_v9 = vld [vmem:[#allocation3 + $0x8] sm:$0xff]  ;;  %v68_v11 = vld [vmem:[#allocation3 + $0x70] sm:$0xff] }
  0x11   :  { %140 = vmatpush.msra.mxu0 %v72_v1  ;;  %v62_v10 = vld [vmem:[#allocation3 + $0x40] sm:$0xff]  ;;  %v56_v12 = vld [vmem:[#allocation3 + $0x10] sm:$0xff]  ;;  %v63_v13 = vld [vmem:[#allocation3 + $0x48] sm:$0xff] }
  0x12   :  { %270 = vmatpush.msra.mxu2 %v71_v2  ;;  %271 = vmatpush.msra.mxu3 %v71_v2  ;;  %v69_v14 = vld [vmem:[#allocation3 + $0x78] sm:$0xff]  ;;  %v64_v16 = vld [vmem:[#allocation3 + $0x50] sm:$0xff]  ;;  %v58_v17 = vld [vmem:[#allocation3 + $0x20] sm:$0xff] }
  0x13   :  { %141 = vmatpush.msra.mxu0 %v71_v2  ;;  %v57_v15 = vld [vmem:[#allocation3 + $0x18] sm:$0xff]  ;;  %v59_v19 = vld [vmem:[#allocation3 + $0x28] sm:$0xff]  ;;  %v279_v28 = vld [vmem:[%s429_s2] ss:$0 sm:$0xff] }
  0x14   :  { %272 = vmatpush.msra.mxu2 %v70_v3  ;;  %273 = vmatpush.msra.mxu3 %v70_v3  ;;  %v65_v18 = vld [vmem:[#allocation3 + $0x58] sm:$0xff] }
  0x15   :  { %256 = vmatmul.msk.f32.vlgmr.msra.gmra.mxu2 %vm78_vm0, %v60_v4  ;;  %262 = vmatmul.msk.f32.vlgmr.msra.gmra.mxu3 %vm78_vm0, %v66_v5  ;;  %v208_v5 = vld [vmem:[%s430_s3] sm:$0x1] }
  0x16   :  { %142 = vmatpush.msra.mxu0 %v70_v3 }
  0x17   :  { %250 = vmatmul.msk.f32.vlgmr.msra.gmra.mxu0 %vm78_vm0, %v54_v6  ;;  %v210_v6 = vstv %s431_s4 }
  0x1d   :  { %257 = vmatmul.msk.f32.gmra.mxu2 %vm78_vm0, %v61_v7  ;;  %263 = vmatmul.msk.f32.gmra.mxu3 %vm78_vm0, %v67_v8 }
  0x1f   :  { %251 = vmatmul.msk.f32.gmra.mxu0 %vm78_vm0, %v55_v9 }
  0x25   :  { %258 = vmatmul.msk.f32.gmra.mxu2 %vm78_vm0, %v62_v10  ;;  %264 = vmatmul.msk.f32.gmra.mxu3 %vm78_vm0, %v68_v11 }
  0x27   :  { %252 = vmatmul.msk.f32.gmra.mxu0 %vm78_vm0, %v56_v12 }
  0x2d   :  { %259 = vmatmul.msk.f32.gmra.mxu2 %vm78_vm0, %v63_v13  ;;  %265 = vmatmul.msk.f32.gmra.mxu3 %vm78_vm0, %v69_v14 }
  0x2f   :  { %253 = vmatmul.msk.f32.gmra.mxu0 %vm78_vm0, %v57_v15 }
  0x35   :  { %260 = vmatmul.msk.f32.gmra.mxu2 %vm78_vm0, %v64_v16 }
  0x37   :  { %254 = vmatmul.msk.f32.gmra.mxu0 %vm78_vm0, %v58_v17 }
  0x3d   :  { %261 = vmatmul.msk.f32.gmra.mxu2 %vm78_vm0, %v65_v18 }
  0x3f   :  { %255 = vmatmul.msk.f32.gmra.mxu0 %vm78_vm0, %v59_v19 }
  0x94   :  { %v144_v22 = vpop.f32.mrf.mxu0 }
  0x95   :  { %v145_v2 = vadd.f32 %v279_v28, %v144_v22 }
  0x97   :  { %v192_v4 = vmax.f32 %v145_v2, 0.0 }
  0x98   :  { %v162_v20 = vpop.f32.mrf.mxu2  ;;  %v180_v21 = vpop.f32.mrf.mxu3 }
  0x99   :  { %v181_v38 = vadd.f32 %v279_v28, %v180_v21  ;;  %v163_v54 = vadd.f32 %v279_v28, %v162_v20 }
  0x9b   :  { %v204_v41 = vmax.f32 %v181_v38, 0.0  ;;  %v198_v57 = vmax.f32 %v163_v54, 0.0 }
  0x9c   :  { %v147_v27 = vpop.f32.mrf.mxu0 }
  0x9d   :  { %v148_v0 = vadd.f32 %v279_v28, %v147_v27 }
  0x9f   :  { %v193_v3 = vmax.f32 %v148_v0, 0.0 }
  0xa0   :  { %v165_v23 = vpop.f32.mrf.mxu2  ;;  %v183_v24 = vpop.f32.mrf.mxu3 }
  0xa1   :  { %v184_v35 = vadd.f32 %v279_v28, %v183_v24  ;;  %v166_v51 = vadd.f32 %v279_v28, %v165_v23 }
  0xa3   :  { %v205_v39 = vmax.f32 %v184_v35, 0.0  ;;  %v199_v55 = vmax.f32 %v166_v51, 0.0 }
  0xa4   :  { %v150_v34 = vpop.f32.mrf.mxu0 }
  0xa5   :  { %v151_v62 = vadd.f32 %v279_v28, %v150_v34 }
  0xa7   :  { %v194_v1 = vmax.f32 %v151_v62, 0.0 }
  0xa8   :  { %v168_v25 = vpop.f32.mrf.mxu2  ;;  %v186_v26 = vpop.f32.mrf.mxu3 }
  0xa9   :  { %v187_v32 = vadd.f32 %v279_v28, %v186_v26  ;;  %v169_v49 = vadd.f32 %v279_v28, %v168_v25 }
  0xab   :  { %v206_v36 = vmax.f32 %v187_v32, 0.0  ;;  %v200_v52 = vmax.f32 %v169_v49, 0.0 }
  0xac   :  { %v153_v40 = vpop.f32.mrf.mxu0 }
  0xad   :  { %v154_v60 = vadd.f32 %v279_v28, %v153_v40 }
  0xaf   :  { %v195_v63 = vmax.f32 %v154_v60, 0.0 }
  0xb0   :  { %v171_v29 = vpop.f32.mrf.mxu2  ;;  %v189_v30 = vpop.f32.mrf.mxu3 }
  0xb1   :  { %v190_v31 = vadd.f32 %v279_v28, %v189_v30  ;;  %v172_v46 = vadd.f32 %v279_v28, %v171_v29 }
  0xb3   :  { %v207_v33 = vmax.f32 %v190_v31, 0.0  ;;  %v201_v50 = vmax.f32 %v172_v46, 0.0 }
  0xb4   :  { %v156_v48 = vpop.f32.mrf.mxu0 }
  0xb5   :  { %211 = vmatpush.xpose.msra.mxu1 %v207_v33  ;;  %v157_v59 = vadd.f32 %v279_v28, %v156_v48 }
  0xb7   :  { %v196_v61 = vmax.f32 %v157_v59, 0.0 }
  0xb8   :  { %v174_v37 = vpop.f32.mrf.mxu2 }
  0xb9   :  { %212 = vmatpush.xpose.msra.mxu1 %v206_v36  ;;  %v175_v44 = vadd.f32 %v279_v28, %v174_v37 }
  0xbb   :  { %v202_v47 = vmax.f32 %v175_v44, 0.0 }
  0xbc   :  { %v159_v53 = vpop.f32.mrf.mxu0 }
  0xbd   :  { %213 = vmatpush.xpose.msra.mxu1 %v205_v39  ;;  %v160_v56 = vadd.f32 %v279_v28, %v159_v53 }
  0xbf   :  { %v197_v58 = vmax.f32 %v160_v56, 0.0 }
  0xc0   :  { %v177_v42 = vpop.f32.mrf.mxu2 }
  0xc1   :  { %v178_v43 = vadd.f32 %v279_v28, %v177_v42  ;;  %214 = vmatpush.xpose.msra.mxu1 %v204_v41 }
  0xc3   :  { %v203_v45 = vmax.f32 %v178_v43, 0.0 }
  0xc5   :  { %215 = vmatpush.xpose.msra.mxu1 %v203_v45 }
  0xc9   :  { %216 = vmatpush.xpose.msra.mxu1 %v202_v47 }
  0xcd   :  { %217 = vmatpush.xpose.msra.mxu1 %v201_v50 }
  0xd1   :  { %218 = vmatpush.xpose.msra.mxu1 %v200_v52 }
  0xd5   :  { %219 = vmatpush.xpose.msra.mxu1 %v199_v55 }
  0xd9   :  { %220 = vmatpush.xpose.msra.mxu1 %v198_v57 }
  0xdd   :  { %221 = vmatpush.xpose.msra.mxu1 %v197_v58 }
  0xe1   :  { %222 = vmatpush.xpose.msra.mxu1 %v196_v61 }
  0xe5   :  { %223 = vmatpush.xpose.msra.mxu1 %v195_v63 }
  0xe9   :  { %224 = vmatpush.xpose.msra.mxu1 %v194_v1 }
  0xed   :  { %225 = vmatpush.xpose.msra.mxu1 %v193_v3 }
  0xf1   :  { %226 = vmatpush.xpose.msra.mxu1 %v192_v4 }
  0xf4   :  { %227 = vmatmul.f32.vlgmr.msra.gmra.mxu1 %v208_v5 }
 0x171   :  { %v228_v7 = vpop.f32.mrf.mxu1 }
 0x172   :  { %v229_v8 = vadd.f32 %v228_v7, %v210_v6 }
 0x174   :  { %231 = vst [vmem:[#allocation8] sm:$0x1] %v229_v8 }
 0x175   :  { %242 = dma.vmem_to_hbm [thread:$0]  %s238_s9, 16, %s240_s12, [#allocation5]  }
 0x176   :  { %356 = dma.done.wait [#allocation5], 16  }
 0x177   :  { %357 = vsyncadd [#allocation5], 4294967280 }
 0x178   :  { %247 = vsyncpa [#allocation4], 1 }
 0x179   :  { %248 = vsyncpa [#allocation7], 1 }
 0x17a   :  { %249 = vsyncpa [#allocation5], 1 }

</bundles_post_ra>
